<compile_context>
chip_gen: v5e
topology: v5e:2x2
jax: 0.10.0
libtpu: 0.0.40
codegen_flags: <defaults>
</compile_context>

<pallas_src>
import jax
import jax.numpy as jnp
from jax import lax
from jax.experimental import pallas as pl
from jax.experimental.pallas import tpu as pltpu

# ---- static configuration (small shapes consistent with the module) ----
C = 16                   # dim (channels)
K = 3                    # kernel_size
DILATIONS = (1, 3, 5)    # dilation (conv2 of each unit uses dilation 1)
LRELU_SLOPE = 0.1
LAYER_SCALE_INIT = None  # module default: gamma is None
N = 2                    # batch
L = 64                   # sequence length per batch element
NL = N * L               # 128 -> one full lane width


def resblock1_kernel(x_ref, w1_ref, b1_ref, w2_ref, b2_ref, g_ref, o_ref):
    x = x_ref[...]                                   # (C, N*L) f32
    b1 = b1_ref[...]                                 # (C, 3)
    b2 = b2_ref[...]                                 # (C, 3)
    gam = g_ref[...]                                 # (C, 3)

    # Lane position within each batch segment (batch folded along lanes).
    pos = lax.broadcasted_iota(jnp.int32, (C, NL), 1) % L

    def lrelu(v):
        # leaky_relu(v, slope) == max(v, slope * v) for 0 < slope < 1 (VPU)
        return jnp.maximum(v, LRELU_SLOPE * v)

    def conv3(t, w, b, d):
        # 3-tap dilated conv with 'same' padding (= d) as a single im2col MXU
        # matmul.  Taps are x[l-d], x[l], x[l+d]; the shifts are built with
        # pltpu.roll (XLU) and masked so they neither wrap around nor cross the
        # per-batch segment boundary inside the folded lane axis.
        lft = jnp.where(pos >= d, pltpu.roll(t, d, axis=1), 0.0)            # x[l-d]
        rgt = jnp.where(pos < (L - d), pltpu.roll(t, NL - d, axis=1), 0.0)  # x[l+d]
        cols = jnp.concatenate([lft, t, rgt], axis=0)                       # (3C, N*L)
        return jnp.dot(w, cols, preferred_element_type=jnp.float32) + b

    h = x
    for u, d in enumerate(DILATIONS):                # unrolled at trace time
        t = lrelu(h)
        t = conv3(t, w1_ref[u], b1[:, u:u + 1], d)   # convs1[u], dilation d
        t = lrelu(t)
        t = conv3(t, w2_ref[u], b2[:, u:u + 1], 1)   # convs2[u], dilation 1
        t = gam[:, u:u + 1] * t                      # layer scale (ones if gamma is None)
        h = h + t                                    # residual add
    o_ref[...] = h


def resblock1_pallas(x, w1p, b1p, w2p, b2p, gp):
    # Fold batch into the lane axis: (N, C, L) -> (C, N*L); gridless call.
    x_f = jnp.transpose(x, (1, 0, 2)).reshape(C, NL)
    out_f = pl.pallas_call(
        resblock1_kernel,
        out_shape=jax.ShapeDtypeStruct((C, NL), jnp.float32),
        in_specs=[pl.BlockSpec(memory_space=pltpu.MemorySpace.VMEM)
                  for _ in range(6)],
        out_specs=pl.BlockSpec(memory_space=pltpu.MemorySpace.VMEM),
    )(x_f, w1p, b1p, w2p, b2p, gp)
    return jnp.transpose(out_f.reshape(C, N, L), (1, 0, 2))   # back to (N, C, L)


# ---------------- plain-JAX parameter setup & reference (glue) ----------------
def weight_norm_weight(key, out_ch, in_ch, k):
    # torch.nn.utils.weight_norm: w = g * v / ||v||  (norm over (in, k) per out-ch)
    kv, kg = jax.random.split(key)
    v = jax.random.normal(kv, (out_ch, in_ch, k), jnp.float32)
    g = 1.0 + 0.1 * jax.random.normal(kg, (out_ch, 1, 1), jnp.float32)
    norm = jnp.sqrt(jnp.sum(v * v, axis=(1, 2), keepdims=True))
    return g * v / norm


def pack_conv_weight(w):
    # (out, in, tap) -> (out, tap*C + in)  to match the im2col column layout
    return jnp.transpose(w, (0, 2, 1)).reshape(C, K * C)


def leaky_relu_ref(x):
    return jnp.where(x >= 0, x, LRELU_SLOPE * x)


def conv1d_ref(x, w, b, dilation=1, padding=0):
    y = lax.conv_general_dilated(
        x, w, window_strides=(1,), padding=[(padding, padding)],
        rhs_dilation=(dilation,), dimension_numbers=("NCH", "OIH", "NCH"),
        precision=lax.Precision.HIGHEST)
    return y + b[None, :, None]


def resblock1_ref(x, w1_list, b1_list, w2_list, b2_list, gammas):
    h = x
    for u, d in enumerate(DILATIONS):
        t = leaky_relu_ref(h)
        t = conv1d_ref(t, w1_list[u], b1_list[u], dilation=d, padding=d)
        t = leaky_relu_ref(t)
        t = conv1d_ref(t, w2_list[u], b2_list[u], dilation=1, padding=1)
        if gammas[u] is not None:
            t = gammas[u][None, :, :] * t
        h = h + t
    return h


if __name__ == "__main__":
    key = jax.random.PRNGKey(0)
    ki = iter(jax.random.split(key, 32))

    x = jax.random.normal(next(ki), (N, C, L), jnp.float32)

    # weight-normalized convs1 (dilated) and convs2 (dilation 1)
    w1_list, b1_list, w2_list, b2_list = [], [], [], []
    for _ in DILATIONS:
        w1_list.append(weight_norm_weight(next(ki), C, C, K))
        b1_list.append(0.1 * jax.random.normal(next(ki), (C,), jnp.float32))
        w2_list.append(weight_norm_weight(next(ki), C, C, K))
        b2_list.append(0.1 * jax.random.normal(next(ki), (C,), jnp.float32))

    # layer scale: module default is None -> unit scale in the kernel
    gammas = [None, None, None] if LAYER_SCALE_INIT is None else \
        [LAYER_SCALE_INIT * jnp.ones((C, 1), jnp.float32) for _ in range(3)]
    gamma_packed = (jnp.ones((C, 3), jnp.float32) if LAYER_SCALE_INIT is None
                    else jnp.concatenate(gammas, axis=1))

    # pack parameters for the kernel (one dense slab per conv)
    w1_packed = jnp.stack([pack_conv_weight(w) for w in w1_list], axis=0)  # (3, C, 3C)
    w2_packed = jnp.stack([pack_conv_weight(w) for w in w2_list], axis=0)  # (3, C, 3C)
    b1_packed = jnp.stack(b1_list, axis=1)                                 # (C, 3)
    b2_packed = jnp.stack(b2_list, axis=1)                                 # (C, 3)

    out = resblock1_pallas(x, w1_packed, b1_packed, w2_packed, b2_packed,
                           gamma_packed)
    out = jax.block_until_ready(out)

    ref = resblock1_ref(x, w1_list, b1_list, w2_list, b2_list, gammas)
    ref = jax.block_until_ready(ref)

    assert out.shape == (N, C, L), out.shape
    # Default (bf16-operand, f32-accumulate) MXU precision per the perf review:
    # expect ~1e-2-scale drift vs the f32 HIGHEST-precision conv reference.
    if not jnp.allclose(out, ref, rtol=5e-2, atol=5e-2):
        raise AssertionError(
            f"mismatch: max abs err = {float(jnp.max(jnp.abs(out - ref)))}")
    print("KERNEL_OK")
</pallas_src>

<mosaic_0001>
module attributes {stable_mosaic.version = 11 : i64} {
  func.func @resblock1_kernel(%arg0: memref<16x128xf32, #tpu.memory_space<vmem>>, %arg1: memref<3x16x48xf32, #tpu.memory_space<vmem>>, %arg2: memref<16x3xf32, #tpu.memory_space<vmem>>, %arg3: memref<3x16x48xf32, #tpu.memory_space<vmem>>, %arg4: memref<16x3xf32, #tpu.memory_space<vmem>>, %arg5: memref<16x3xf32, #tpu.memory_space<vmem>>, %arg6: memref<16x128xf32, #tpu.memory_space<vmem>>) attributes {dimension_semantics = [], scalar_prefetch = 0 : i64, scratch_operands = 0 : i64, tpu.core_type = #tpu.core_type<tc>} {
    %c0 = arith.constant 0 : index
    %c0_0 = arith.constant 0 : index
    %0 = vector.load %arg0[%c0, %c0_0] : memref<16x128xf32, #tpu.memory_space<vmem>>, vector<16x128xf32>
    %c0_1 = arith.constant 0 : index
    %c0_2 = arith.constant 0 : index
    %1 = vector.load %arg2[%c0_1, %c0_2] : memref<16x3xf32, #tpu.memory_space<vmem>>, vector<16x3xf32>
    %c0_3 = arith.constant 0 : index
    %c0_4 = arith.constant 0 : index
    %2 = vector.load %arg4[%c0_3, %c0_4] : memref<16x3xf32, #tpu.memory_space<vmem>>, vector<16x3xf32>
    %c0_5 = arith.constant 0 : index
    %c0_6 = arith.constant 0 : index
    %3 = vector.load %arg5[%c0_5, %c0_6] : memref<16x3xf32, #tpu.memory_space<vmem>>, vector<16x3xf32>
    %4 = tpu.iota {dimensions = array<i32: 1>} : vector<16x128xi32>
    %c64_i32 = arith.constant 64 : i32
    %c0_i32 = arith.constant 0 : i32
    %5 = arith.cmpi eq, %c64_i32, %c0_i32 : i32
    %c1_i32 = arith.constant 1 : i32
    %6 = arith.select %5, %c1_i32, %c64_i32 : i32
    %7 = vector.broadcast %6 : i32 to vector<16x128xi32>
    %8 = arith.remsi %4, %7 : vector<16x128xi32>
    %c0_i32_7 = arith.constant 0 : i32
    %9 = vector.broadcast %c0_i32_7 : i32 to vector<16x128xi32>
    %10 = arith.cmpi ne, %8, %9 : vector<16x128xi32>
    %c0_i32_8 = arith.constant 0 : i32
    %11 = vector.broadcast %c0_i32_8 : i32 to vector<16x128xi32>
    %12 = arith.cmpi slt, %8, %11 : vector<16x128xi32>
    %c0_i32_9 = arith.constant 0 : i32
    %13 = arith.cmpi slt, %6, %c0_i32_9 : i32
    %14 = vector.broadcast %13 : i1 to vector<16x128xi1>
    %15 = vector.broadcast %14 : vector<16x128xi1> to vector<16x128xi1>
    %16 = arith.xori %12, %15 : vector<16x128xi1>
    %17 = arith.andi %16, %10 : vector<16x128xi1>
    %18 = vector.broadcast %6 : i32 to vector<16x128xi32>
    %19 = arith.addi %8, %18 : vector<16x128xi32>
    %20 = arith.select %17, %19, %8 : vector<16x128xi1>, vector<16x128xi32>
    %cst = arith.constant 1.000000e-01 : f32
    %21 = vector.broadcast %cst : f32 to vector<16x128xf32>
    %22 = arith.mulf %21, %0 : vector<16x128xf32>
    %23 = arith.maximumf %0, %22 : vector<16x128xf32>
    %c0_10 = arith.constant 0 : index
    %c0_11 = arith.constant 0 : index
    %c0_12 = arith.constant 0 : index
    %24 = vector.load %arg1[%c0_10, %c0_11, %c0_12] : memref<3x16x48xf32, #tpu.memory_space<vmem>>, vector<1x16x48xf32>
    %25 = vector.shape_cast %24 : vector<1x16x48xf32> to vector<16x48xf32>
    %26 = vector.extract_strided_slice %1 {offsets = [0, 0], sizes = [16, 1], strides = [1, 1]} : vector<16x3xf32> to vector<16x1xf32>
    %c1_i32_13 = arith.constant 1 : i32
    %27 = vector.broadcast %c1_i32_13 : i32 to vector<16x128xi32>
    %28 = arith.cmpi sge, %20, %27 : vector<16x128xi32>
    %c1_i32_14 = arith.constant 1 : i32
    %29 = tpu.dynamic_rotate %23 by %c1_i32_14 dim 1 : vector<16x128xf32>, i32 -> vector<16x128xf32>
    %cst_15 = arith.constant 0.000000e+00 : f32
    %30 = vector.broadcast %cst_15 : f32 to vector<16x128xf32>
    %31 = arith.select %28, %29, %30 : vector<16x128xi1>, vector<16x128xf32>
    %c63_i32 = arith.constant 63 : i32
    %32 = vector.broadcast %c63_i32 : i32 to vector<16x128xi32>
    %33 = arith.cmpi slt, %20, %32 : vector<16x128xi32>
    %c127_i32 = arith.constant 127 : i32
    %34 = tpu.dynamic_rotate %23 by %c127_i32 dim 1 : vector<16x128xf32>, i32 -> vector<16x128xf32>
    %cst_16 = arith.constant 0.000000e+00 : f32
    %35 = vector.broadcast %cst_16 : f32 to vector<16x128xf32>
    %36 = arith.select %33, %34, %35 : vector<16x128xi1>, vector<16x128xf32>
    %37 = tpu.concatenate %31, %23, %36 in 0 : vector<16x128xf32>, vector<16x128xf32>, vector<16x128xf32> -> vector<48x128xf32>
    %cst_17 = arith.constant dense<0.000000e+00> : vector<16x128xf32>
    %38 = tpu.matmul %25, %37, %cst_17 {dimension_numbers = #tpu.dot_dimension_numbers<[1], [0], [0], [1], [0, 0, 1, 1], [], []>} : vector<16x48xf32>, vector<48x128xf32>, vector<16x128xf32> -> vector<16x128xf32>
    %39 = vector.broadcast %26 : vector<16x1xf32> to vector<16x128xf32>
    %40 = arith.addf %38, %39 : vector<16x128xf32>
    %cst_18 = arith.constant 1.000000e-01 : f32
    %41 = vector.broadcast %cst_18 : f32 to vector<16x128xf32>
    %42 = arith.mulf %41, %40 : vector<16x128xf32>
    %43 = arith.maximumf %40, %42 : vector<16x128xf32>
    %c0_19 = arith.constant 0 : index
    %c0_20 = arith.constant 0 : index
    %c0_21 = arith.constant 0 : index
    %44 = vector.load %arg3[%c0_19, %c0_20, %c0_21] : memref<3x16x48xf32, #tpu.memory_space<vmem>>, vector<1x16x48xf32>
    %45 = vector.shape_cast %44 : vector<1x16x48xf32> to vector<16x48xf32>
    %46 = vector.extract_strided_slice %2 {offsets = [0, 0], sizes = [16, 1], strides = [1, 1]} : vector<16x3xf32> to vector<16x1xf32>
    %c1_i32_22 = arith.constant 1 : i32
    %47 = vector.broadcast %c1_i32_22 : i32 to vector<16x128xi32>
    %48 = arith.cmpi sge, %20, %47 : vector<16x128xi32>
    %c1_i32_23 = arith.constant 1 : i32
    %49 = tpu.dynamic_rotate %43 by %c1_i32_23 dim 1 : vector<16x128xf32>, i32 -> vector<16x128xf32>
    %cst_24 = arith.constant 0.000000e+00 : f32
    %50 = vector.broadcast %cst_24 : f32 to vector<16x128xf32>
    %51 = arith.select %48, %49, %50 : vector<16x128xi1>, vector<16x128xf32>
    %c63_i32_25 = arith.constant 63 : i32
    %52 = vector.broadcast %c63_i32_25 : i32 to vector<16x128xi32>
    %53 = arith.cmpi slt, %20, %52 : vector<16x128xi32>
    %c127_i32_26 = arith.constant 127 : i32
    %54 = tpu.dynamic_rotate %43 by %c127_i32_26 dim 1 : vector<16x128xf32>, i32 -> vector<16x128xf32>
    %cst_27 = arith.constant 0.000000e+00 : f32
    %55 = vector.broadcast %cst_27 : f32 to vector<16x128xf32>
    %56 = arith.select %53, %54, %55 : vector<16x128xi1>, vector<16x128xf32>
    %57 = tpu.concatenate %51, %43, %56 in 0 : vector<16x128xf32>, vector<16x128xf32>, vector<16x128xf32> -> vector<48x128xf32>
    %cst_28 = arith.constant dense<0.000000e+00> : vector<16x128xf32>
    %58 = tpu.matmul %45, %57, %cst_28 {dimension_numbers = #tpu.dot_dimension_numbers<[1], [0], [0], [1], [0, 0, 1, 1], [], []>} : vector<16x48xf32>, vector<48x128xf32>, vector<16x128xf32> -> vector<16x128xf32>
    %59 = vector.broadcast %46 : vector<16x1xf32> to vector<16x128xf32>
    %60 = arith.addf %58, %59 : vector<16x128xf32>
    %61 = vector.extract_strided_slice %3 {offsets = [0, 0], sizes = [16, 1], strides = [1, 1]} : vector<16x3xf32> to vector<16x1xf32>
    %62 = vector.broadcast %61 : vector<16x1xf32> to vector<16x128xf32>
    %63 = arith.mulf %62, %60 : vector<16x128xf32>
    %64 = arith.addf %0, %63 : vector<16x128xf32>
    %cst_29 = arith.constant 1.000000e-01 : f32
    %65 = vector.broadcast %cst_29 : f32 to vector<16x128xf32>
    %66 = arith.mulf %65, %64 : vector<16x128xf32>
    %67 = arith.maximumf %64, %66 : vector<16x128xf32>
    %c1 = arith.constant 1 : index
    %c0_30 = arith.constant 0 : index
    %c0_31 = arith.constant 0 : index
    %68 = vector.load %arg1[%c1, %c0_30, %c0_31] : memref<3x16x48xf32, #tpu.memory_space<vmem>>, vector<1x16x48xf32>
    %69 = vector.shape_cast %68 : vector<1x16x48xf32> to vector<16x48xf32>
    %70 = vector.extract_strided_slice %1 {offsets = [0, 1], sizes = [16, 1], strides = [1, 1]} : vector<16x3xf32> to vector<16x1xf32>
    %c3_i32 = arith.constant 3 : i32
    %71 = vector.broadcast %c3_i32 : i32 to vector<16x128xi32>
    %72 = arith.cmpi sge, %20, %71 : vector<16x128xi32>
    %c3_i32_32 = arith.constant 3 : i32
    %73 = tpu.dynamic_rotate %67 by %c3_i32_32 dim 1 : vector<16x128xf32>, i32 -> vector<16x128xf32>
    %cst_33 = arith.constant 0.000000e+00 : f32
    %74 = vector.broadcast %cst_33 : f32 to vector<16x128xf32>
    %75 = arith.select %72, %73, %74 : vector<16x128xi1>, vector<16x128xf32>
    %c61_i32 = arith.constant 61 : i32
    %76 = vector.broadcast %c61_i32 : i32 to vector<16x128xi32>
    %77 = arith.cmpi slt, %20, %76 : vector<16x128xi32>
    %c125_i32 = arith.constant 125 : i32
    %78 = tpu.dynamic_rotate %67 by %c125_i32 dim 1 : vector<16x128xf32>, i32 -> vector<16x128xf32>
    %cst_34 = arith.constant 0.000000e+00 : f32
    %79 = vector.broadcast %cst_34 : f32 to vector<16x128xf32>
    %80 = arith.select %77, %78, %79 : vector<16x128xi1>, vector<16x128xf32>
    %81 = tpu.concatenate %75, %67, %80 in 0 : vector<16x128xf32>, vector<16x128xf32>, vector<16x128xf32> -> vector<48x128xf32>
    %cst_35 = arith.constant dense<0.000000e+00> : vector<16x128xf32>
    %82 = tpu.matmul %69, %81, %cst_35 {dimension_numbers = #tpu.dot_dimension_numbers<[1], [0], [0], [1], [0, 0, 1, 1], [], []>} : vector<16x48xf32>, vector<48x128xf32>, vector<16x128xf32> -> vector<16x128xf32>
    %83 = vector.broadcast %70 : vector<16x1xf32> to vector<16x128xf32>
    %84 = arith.addf %82, %83 : vector<16x128xf32>
    %cst_36 = arith.constant 1.000000e-01 : f32
    %85 = vector.broadcast %cst_36 : f32 to vector<16x128xf32>
    %86 = arith.mulf %85, %84 : vector<16x128xf32>
    %87 = arith.maximumf %84, %86 : vector<16x128xf32>
    %c1_37 = arith.constant 1 : index
    %c0_38 = arith.constant 0 : index
    %c0_39 = arith.constant 0 : index
    %88 = vector.load %arg3[%c1_37, %c0_38, %c0_39] : memref<3x16x48xf32, #tpu.memory_space<vmem>>, vector<1x16x48xf32>
    %89 = vector.shape_cast %88 : vector<1x16x48xf32> to vector<16x48xf32>
    %90 = vector.extract_strided_slice %2 {offsets = [0, 1], sizes = [16, 1], strides = [1, 1]} : vector<16x3xf32> to vector<16x1xf32>
    %c1_i32_40 = arith.constant 1 : i32
    %91 = vector.broadcast %c1_i32_40 : i32 to vector<16x128xi32>
    %92 = arith.cmpi sge, %20, %91 : vector<16x128xi32>
    %c1_i32_41 = arith.constant 1 : i32
    %93 = tpu.dynamic_rotate %87 by %c1_i32_41 dim 1 : vector<16x128xf32>, i32 -> vector<16x128xf32>
    %cst_42 = arith.constant 0.000000e+00 : f32
    %94 = vector.broadcast %cst_42 : f32 to vector<16x128xf32>
    %95 = arith.select %92, %93, %94 : vector<16x128xi1>, vector<16x128xf32>
    %c63_i32_43 = arith.constant 63 : i32
    %96 = vector.broadcast %c63_i32_43 : i32 to vector<16x128xi32>
    %97 = arith.cmpi slt, %20, %96 : vector<16x128xi32>
    %c127_i32_44 = arith.constant 127 : i32
    %98 = tpu.dynamic_rotate %87 by %c127_i32_44 dim 1 : vector<16x128xf32>, i32 -> vector<16x128xf32>
    %cst_45 = arith.constant 0.000000e+00 : f32
    %99 = vector.broadcast %cst_45 : f32 to vector<16x128xf32>
    %100 = arith.select %97, %98, %99 : vector<16x128xi1>, vector<16x128xf32>
    %101 = tpu.concatenate %95, %87, %100 in 0 : vector<16x128xf32>, vector<16x128xf32>, vector<16x128xf32> -> vector<48x128xf32>
    %cst_46 = arith.constant dense<0.000000e+00> : vector<16x128xf32>
    %102 = tpu.matmul %89, %101, %cst_46 {dimension_numbers = #tpu.dot_dimension_numbers<[1], [0], [0], [1], [0, 0, 1, 1], [], []>} : vector<16x48xf32>, vector<48x128xf32>, vector<16x128xf32> -> vector<16x128xf32>
    %103 = vector.broadcast %90 : vector<16x1xf32> to vector<16x128xf32>
    %104 = arith.addf %102, %103 : vector<16x128xf32>
    %105 = vector.extract_strided_slice %3 {offsets = [0, 1], sizes = [16, 1], strides = [1, 1]} : vector<16x3xf32> to vector<16x1xf32>
    %106 = vector.broadcast %105 : vector<16x1xf32> to vector<16x128xf32>
    %107 = arith.mulf %106, %104 : vector<16x128xf32>
    %108 = arith.addf %64, %107 : vector<16x128xf32>
    %cst_47 = arith.constant 1.000000e-01 : f32
    %109 = vector.broadcast %cst_47 : f32 to vector<16x128xf32>
    %110 = arith.mulf %109, %108 : vector<16x128xf32>
    %111 = arith.maximumf %108, %110 : vector<16x128xf32>
    %c2 = arith.constant 2 : index
    %c0_48 = arith.constant 0 : index
    %c0_49 = arith.constant 0 : index
    %112 = vector.load %arg1[%c2, %c0_48, %c0_49] : memref<3x16x48xf32, #tpu.memory_space<vmem>>, vector<1x16x48xf32>
    %113 = vector.shape_cast %112 : vector<1x16x48xf32> to vector<16x48xf32>
    %114 = vector.extract_strided_slice %1 {offsets = [0, 2], sizes = [16, 1], strides = [1, 1]} : vector<16x3xf32> to vector<16x1xf32>
    %c5_i32 = arith.constant 5 : i32
    %115 = vector.broadcast %c5_i32 : i32 to vector<16x128xi32>
    %116 = arith.cmpi sge, %20, %115 : vector<16x128xi32>
    %c5_i32_50 = arith.constant 5 : i32
    %117 = tpu.dynamic_rotate %111 by %c5_i32_50 dim 1 : vector<16x128xf32>, i32 -> vector<16x128xf32>
    %cst_51 = arith.constant 0.000000e+00 : f32
    %118 = vector.broadcast %cst_51 : f32 to vector<16x128xf32>
    %119 = arith.select %116, %117, %118 : vector<16x128xi1>, vector<16x128xf32>
    %c59_i32 = arith.constant 59 : i32
    %120 = vector.broadcast %c59_i32 : i32 to vector<16x128xi32>
    %121 = arith.cmpi slt, %20, %120 : vector<16x128xi32>
    %c123_i32 = arith.constant 123 : i32
    %122 = tpu.dynamic_rotate %111 by %c123_i32 dim 1 : vector<16x128xf32>, i32 -> vector<16x128xf32>
    %cst_52 = arith.constant 0.000000e+00 : f32
    %123 = vector.broadcast %cst_52 : f32 to vector<16x128xf32>
    %124 = arith.select %121, %122, %123 : vector<16x128xi1>, vector<16x128xf32>
    %125 = tpu.concatenate %119, %111, %124 in 0 : vector<16x128xf32>, vector<16x128xf32>, vector<16x128xf32> -> vector<48x128xf32>
    %cst_53 = arith.constant dense<0.000000e+00> : vector<16x128xf32>
    %126 = tpu.matmul %113, %125, %cst_53 {dimension_numbers = #tpu.dot_dimension_numbers<[1], [0], [0], [1], [0, 0, 1, 1], [], []>} : vector<16x48xf32>, vector<48x128xf32>, vector<16x128xf32> -> vector<16x128xf32>
    %127 = vector.broadcast %114 : vector<16x1xf32> to vector<16x128xf32>
    %128 = arith.addf %126, %127 : vector<16x128xf32>
    %cst_54 = arith.constant 1.000000e-01 : f32
    %129 = vector.broadcast %cst_54 : f32 to vector<16x128xf32>
    %130 = arith.mulf %129, %128 : vector<16x128xf32>
    %131 = arith.maximumf %128, %130 : vector<16x128xf32>
    %c2_55 = arith.constant 2 : index
    %c0_56 = arith.constant 0 : index
    %c0_57 = arith.constant 0 : index
    %132 = vector.load %arg3[%c2_55, %c0_56, %c0_57] : memref<3x16x48xf32, #tpu.memory_space<vmem>>, vector<1x16x48xf32>
    %133 = vector.shape_cast %132 : vector<1x16x48xf32> to vector<16x48xf32>
    %134 = vector.extract_strided_slice %2 {offsets = [0, 2], sizes = [16, 1], strides = [1, 1]} : vector<16x3xf32> to vector<16x1xf32>
    %c1_i32_58 = arith.constant 1 : i32
    %135 = vector.broadcast %c1_i32_58 : i32 to vector<16x128xi32>
    %136 = arith.cmpi sge, %20, %135 : vector<16x128xi32>
    %c1_i32_59 = arith.constant 1 : i32
    %137 = tpu.dynamic_rotate %131 by %c1_i32_59 dim 1 : vector<16x128xf32>, i32 -> vector<16x128xf32>
    %cst_60 = arith.constant 0.000000e+00 : f32
    %138 = vector.broadcast %cst_60 : f32 to vector<16x128xf32>
    %139 = arith.select %136, %137, %138 : vector<16x128xi1>, vector<16x128xf32>
    %c63_i32_61 = arith.constant 63 : i32
    %140 = vector.broadcast %c63_i32_61 : i32 to vector<16x128xi32>
    %141 = arith.cmpi slt, %20, %140 : vector<16x128xi32>
    %c127_i32_62 = arith.constant 127 : i32
    %142 = tpu.dynamic_rotate %131 by %c127_i32_62 dim 1 : vector<16x128xf32>, i32 -> vector<16x128xf32>
    %cst_63 = arith.constant 0.000000e+00 : f32
    %143 = vector.broadcast %cst_63 : f32 to vector<16x128xf32>
    %144 = arith.select %141, %142, %143 : vector<16x128xi1>, vector<16x128xf32>
    %145 = tpu.concatenate %139, %131, %144 in 0 : vector<16x128xf32>, vector<16x128xf32>, vector<16x128xf32> -> vector<48x128xf32>
    %cst_64 = arith.constant dense<0.000000e+00> : vector<16x128xf32>
    %146 = tpu.matmul %133, %145, %cst_64 {dimension_numbers = #tpu.dot_dimension_numbers<[1], [0], [0], [1], [0, 0, 1, 1], [], []>} : vector<16x48xf32>, vector<48x128xf32>, vector<16x128xf32> -> vector<16x128xf32>
    %147 = vector.broadcast %134 : vector<16x1xf32> to vector<16x128xf32>
    %148 = arith.addf %146, %147 : vector<16x128xf32>
    %149 = vector.extract_strided_slice %3 {offsets = [0, 2], sizes = [16, 1], strides = [1, 1]} : vector<16x3xf32> to vector<16x1xf32>
    %150 = vector.broadcast %149 : vector<16x1xf32> to vector<16x128xf32>
    %151 = arith.mulf %150, %148 : vector<16x128xf32>
    %152 = arith.addf %108, %151 : vector<16x128xf32>
    %c0_65 = arith.constant 0 : index
    %c0_66 = arith.constant 0 : index
    %153 = vector.load %arg6[%c0_65, %c0_66] : memref<16x128xf32, #tpu.memory_space<vmem>>, vector<16x128xf32>
    tpu.vector_store %arg6[%c0_65, %c0_66], %152 {strides = array<i32>} : memref<16x128xf32, #tpu.memory_space<vmem>>, vector<16x128xf32>,
    return
  }
}

</mosaic_0001>

<bundles_post_ra>
// kernel: tpu_custom_call.1
= control target key start
LH: loop header
LB: loop body
LE: loop exit
PB: predicated region body
PF: predicated region fallthrough
CT: control target
= control target key end

     0   :  { %11 = vsyncpa [#allocation3], 0  ;;  %s859_s0 = inlined_call_operand.vmem [shape: f32[16,128], index: 0, kind: input, shape index: {}]   ;;  %s860_s1 = inlined_call_operand.hbm [shape: f32[3,16,48], index: 1, kind: input, shape index: {}]   ;;  %s861_s2 = inlined_call_operand.vmem [shape: f32[16,3], index: 2, kind: input, shape index: {}]   ;;  %s862_s3 = inlined_call_operand.hbm [shape: f32[3,16,48], index: 3, kind: input, shape index: {}]   ;;  %s863_s4 = inlined_call_operand.vmem [shape: f32[16,3], index: 4, kind: input, shape index: {}]   ;;  %s864_s5 = inlined_call_operand.vmem [shape: f32[16,3], index: 5, kind: input, shape index: {}]   ;;  %s865_s6 = inlined_call_operand.hbm [shape: f32[16,128], index: 6, kind: output, shape index: {}]  }
   0x1   :  { %12 = vsyncpa [#allocation6], 0 }
   0x2   :  { %13 = vsyncpa [#allocation4], 0  ;;  %s20_s23 = sshll.u32 %s860_s1, 4  ;;  %s632_s24 = smov [#allocation2]   ;;  %s21_s23 = int_to_ptr.hbm [resolvable:$true] %s20_s23 }
   0x3   :  { %s22_s25 = sshll.u32 %s632_s24, 4  ;;  %s35_s28 = sshll.u32 %s862_s3, 4  ;;  %s23_s25 = int_to_ptr.vmem [resolvable:$true] %s22_s25  ;;  %s36_s28 = int_to_ptr.hbm [resolvable:$true] %s35_s28 }
   0x4   :  { %s633_s29 = smov 128   ;;  %s634_s30 = smov 8  }
   0x5   :  { %28 = dma.hbm_to_vmem [thread:$0]  %s21_s23, 768, %s23_s25, [#allocation3], %s633_s29, %s633_s29, %s634_s30  }
   0x6   :  { %s635_s7 = smov [#allocation5]  }
   0x7   :  { %s37_s8 = sshll.u32 %s635_s7, 4  ;;  %s38_s8 = int_to_ptr.vmem [resolvable:$true] %s37_s8 }
   0x8   :  { %43 = dma.hbm_to_vmem [thread:$0]  %s36_s28, 768, %s38_s8, [#allocation6], %s633_s29, %s633_s29, %s634_s30  }
   0x9   :  { %626 = dma.done.wait [#allocation3], 768  }
   0xa   :  { %627 = vsyncadd [#allocation3], 4294966528 }
   0xb   :  { %628 = dma.done.wait [#allocation6], 768  }
   0xc   :  { %629 = vsyncadd [#allocation6], 4294966528  ;;  %v696_v0 = vld [vmem:[%s859_s0 + $0x8] sm:$0xff]  ;;  %v702_v2 = vld [vmem:[%s859_s0] sm:$0xff]  ;;  %s636_s11 = smov 127   ;;  %s637_s12 = smov 1   ;;  %v64_v6 = vlaneseq }
   0xd   :  { %v79_v1 = vmul.f32 0.1, %v696_v0  ;;  %v78_v4 = vmul.f32 0.1, %v702_v2  ;;  %v716_v9 = vld [vmem:[%s861_s2 + $0x8] sm:$0xff]  ;;  %v638_v10 = vmov 0  }
   0xe   :  { %v65_v7 = vand.u32 127, %v64_v6  ;;  %545 = vset.pattern.permute.xlu2 %v638_v10  ;;  %546 = vset.pattern.permute.xlu1 %v638_v10  ;;  %v725_v12 = vld [vmem:[%s861_s2] sm:$0xff]  ;;  %vm108_vm2 = vcmask 392192   ;;  %v83_v17 = vld [vmem:[#allocation2 + $0x8] sm:$0xff]  ;;  %v142_v35 = vld [vmem:[#allocation5] sm:$0xff]  ;;  %v641_v55 = vmov 1  }
   0xf   :  { %v81_v3 = vmax.f32 %v696_v0, %v79_v1  ;;  %v80_v5 = vmax.f32 %v702_v2, %v78_v4  ;;  %105 = vperm.xlu2 %545, %v716_v9   ;;  %547 = vset.pattern.permute.xlu0 %v638_v10  ;;  %v82_v16 = vld [vmem:[#allocation2] sm:$0xff]  ;;  %v750_v29 = vld [vmem:[%s863_s4 + $0x8] sm:$0xff]  ;;  %v143_v37 = vld [vmem:[#allocation5 + $0x8] sm:$0xff]  ;;  %s642_s23 = smov 5   ;;  %s643_s24 = smov 123  }
  0x10   :  { %v711_v8 = vand.u32 63, %v65_v7  ;;  %v743_v28 = vld [vmem:[%s863_s4] sm:$0xff]  ;;  %v762_v31 = vld [vmem:[%s864_s5 + $0x8] sm:$0xff]  ;;  %s639_s4 = smov 3   ;;  %v214_v58 = vld [vmem:[#allocation2 + $0x10] sm:$0xff]  ;;  %s645_s25 = smov [#allocation7]  }
  0x11   :  { %94 = vrot.lane.b32.xlu0 %v81_v3, %s636_s11  ;;  %87 = vrot.lane.b32.xlu1 %v81_v3, %s637_s12  ;;  %v756_v30 = vld [vmem:[%s864_s5] sm:$0xff]  ;;  %s640_s5 = smov 125   ;;  %v215_v60 = vld [vmem:[#allocation2 + $0x18] sm:$0xff]  ;;  %s467_s26 = sshll.u32 %s645_s25, 4  ;;  %s468_s26 = int_to_ptr.vmem [resolvable:$true] %s467_s26 }
  0x12   :  { %vm91_vm0 = vcmp.lt.s32.totalorder %v711_v8, 63  ;;  %vm84_vm1 = vcmp.ge.s32.totalorder %v711_v8, 1  ;;  %vm223_vm3 = vcmp.lt.s32.totalorder %v711_v8, 61  ;;  %vm216_vm4 = vcmp.ge.s32.totalorder %v711_v8, 3  ;;  %s469_s7 = sshll.u32 %s865_s6, 4  ;;  %s470_s7 = int_to_ptr.hbm [resolvable:$true] %s469_s7 }
  0x13   :  { %vm349_vm5 = vcmp.lt.s32.totalorder %v711_v8, 59  ;;  %vm342_vm6 = vcmp.ge.s32.totalorder %v711_v8, 5 }
  0x17   :  { %100 = vperm.xlu2 %545, %v725_v12  }
  0x19   :  { %92 = vrot.lane.b32.xlu0 %v80_v5, %s636_s11  ;;  %85 = vrot.lane.b32.xlu1 %v80_v5, %s637_s12 }
  0x69   :  { %v106_v18 = vpop.permute.xlu2 %105 }
  0x71   :  { %v101_v19 = vpop.permute.xlu2 %100 }
  0x83   :  { %v95_v11 = vpop.permute.xlu0 %94  ;;  %v88_v13 = vpop.permute.xlu1 %87 }
  0x84   :  { %483 = vmatpush.msk.msra.mxu0 %vm91_vm0, %v95_v11 }
  0x8b   :  { %v93_v14 = vpop.permute.xlu0 %92  ;;  %v86_v15 = vpop.permute.xlu1 %85 }
  0x8c   :  { %484 = vmatpush.msk.msra.mxu0 %vm91_vm0, %v93_v14 }
  0x8e   :  { %127 = vmatpush.msra.mxu0 %v81_v3 }
  0x90   :  { %128 = vmatpush.msra.mxu0 %v80_v5 }
  0x92   :  { %485 = vmatpush.msk.msra.mxu0 %vm84_vm1, %v88_v13  ;;  %v272_v13 = vld [vmem:[#allocation5 + $0x10] sm:$0xff] }
  0x94   :  { %486 = vmatpush.msk.msra.mxu0 %vm84_vm1, %v86_v15  ;;  %v273_v15 = vld [vmem:[#allocation5 + $0x18] sm:$0xff] }
  0x95   :  { %487 = vmatmul.msk.f32.vlgmr.msra.gmra.mxu0 %vm108_vm2, %v82_v16 }
  0x9d   :  { %488 = vmatmul.msk.f32.gmra.mxu0 %vm108_vm2, %v83_v17 }
 0x112   :  { %v132_v20 = vpop.f32.mrf.mxu0 }
 0x113   :  { %v133_v21 = vadd.f32 %v132_v20, %v101_v19 }
 0x115   :  { %v138_v22 = vmul.f32 0.1, %v133_v21 }
 0x117   :  { %v140_v23 = vmax.f32 %v133_v21, %v138_v22 }
 0x119   :  { %150 = vrot.lane.b32.xlu1 %v140_v23, %s636_s11 }
 0x11a   :  { %v135_v24 = vpop.f32.mrf.mxu0 }
 0x11b   :  { %v136_v25 = vadd.f32 %v135_v24, %v106_v18 }
 0x11d   :  { %v139_v26 = vmul.f32 0.1, %v136_v25 }
 0x11f   :  { %v141_v27 = vmax.f32 %v136_v25, %v139_v26 }
 0x121   :  { %146 = vrot.lane.b32.xlu2 %v141_v27, %s637_s12  ;;  %152 = vrot.lane.b32.xlu0 %v141_v27, %s636_s11 }
 0x122   :  { %163 = vperm.xlu1 %546, %v750_v29  }
 0x129   :  { %158 = vperm.xlu2 %545, %v743_v28   ;;  %144 = vrot.lane.b32.xlu0 %v140_v23, %s637_s12 }
 0x12a   :  { %197 = vperm.xlu1 %546, %v756_v30  }
 0x131   :  { %202 = vperm.xlu0 %547, %v762_v31   ;;  %549 = vset.pattern.permute.xlu2 %v641_v55 }
 0x132   :  { %548 = vset.pattern.permute.xlu1 %v641_v55 }
 0x139   :  { %550 = vset.pattern.permute.xlu0 %v641_v55 }
 0x17b   :  { %v147_v34 = vpop.permute.xlu2 %146 }
 0x183   :  { %v159_v39 = vpop.permute.xlu2 %158 }
 0x18b   :  { %v151_v33 = vpop.permute.xlu1 %150 }
 0x193   :  { %v153_v32 = vpop.permute.xlu0 %152 }
 0x194   :  { %489 = vmatpush.msk.msra.mxu1 %vm91_vm0, %v153_v32  ;;  %v164_v38 = vpop.permute.xlu1 %163 }
 0x196   :  { %490 = vmatpush.msk.msra.mxu1 %vm91_vm0, %v151_v33 }
 0x198   :  { %184 = vmatpush.msra.mxu1 %v141_v27 }
 0x19a   :  { %185 = vmatpush.msra.mxu1 %v140_v23 }
 0x19b   :  { %v145_v36 = vpop.permute.xlu0 %144 }
 0x19c   :  { %491 = vmatpush.msk.msra.mxu1 %vm84_vm1, %v147_v34  ;;  %v198_v42 = vpop.permute.xlu1 %197 }
 0x19e   :  { %492 = vmatpush.msk.msra.mxu1 %vm84_vm1, %v145_v36  ;;  %v644_v36 = vmov 2  }
 0x19f   :  { %493 = vmatmul.msk.f32.vlgmr.msra.gmra.mxu1 %vm108_vm2, %v142_v35 }
 0x1a3   :  { %v203_v47 = vpop.permute.xlu0 %202 }
 0x1a7   :  { %494 = vmatmul.msk.f32.gmra.mxu1 %vm108_vm2, %v143_v37 }
 0x21c   :  { %v189_v40 = vpop.f32.mrf.mxu1 }
 0x21d   :  { %v190_v41 = vadd.f32 %v189_v40, %v159_v39 }
 0x21f   :  { %v205_v43 = vmul.f32 %v198_v42, %v190_v41 }
 0x221   :  { %v776_v44 = vadd.f32 %v205_v43, %v702_v2 }
 0x223   :  { %v209_v45 = vmul.f32 0.1, %v776_v44 }
 0x224   :  { %v192_v46 = vpop.f32.mrf.mxu1 }
 0x225   :  { %v193_v48 = vadd.f32 %v192_v46, %v164_v38  ;;  %v211_v49 = vmax.f32 %v776_v44, %v209_v45 }
 0x227   :  { %v206_v50 = vmul.f32 %v203_v47, %v193_v48  ;;  %217 = vrot.lane.b32.xlu0 %v211_v49, %s639_s4  ;;  %224 = vrot.lane.b32.xlu1 %v211_v49, %s640_s5 }
 0x229   :  { %v781_v51 = vadd.f32 %v206_v50, %v696_v0 }
 0x22b   :  { %v210_v52 = vmul.f32 0.1, %v781_v51 }
 0x22d   :  { %v212_v53 = vmax.f32 %v781_v51, %v210_v52 }
 0x22f   :  { %226 = vrot.lane.b32.xlu2 %v212_v53, %s640_s5  ;;  %235 = vperm.xlu1 %548, %v716_v9  }
 0x237   :  { %219 = vrot.lane.b32.xlu2 %v212_v53, %s639_s4 }
 0x23f   :  { %231 = vperm.xlu2 %549, %v725_v12  }
 0x289   :  { %v227_v54 = vpop.permute.xlu2 %226 }
 0x28a   :  { %495 = vmatpush.msk.msra.mxu2 %vm223_vm3, %v227_v54 }
 0x291   :  { %v220_v57 = vpop.permute.xlu2 %219 }
 0x299   :  { %v225_v56 = vpop.permute.xlu1 %224  ;;  %v218_v59 = vpop.permute.xlu0 %217 }
 0x29a   :  { %496 = vmatpush.msk.msra.mxu2 %vm223_vm3, %v225_v56  ;;  %v232_v61 = vpop.permute.xlu2 %231 }
 0x29c   :  { %256 = vmatpush.msra.mxu2 %v212_v53 }
 0x29e   :  { %257 = vmatpush.msra.mxu2 %v211_v49 }
 0x2a0   :  { %497 = vmatpush.msk.msra.mxu2 %vm216_vm4, %v220_v57 }
 0x2a1   :  { %v236_v2 = vpop.permute.xlu1 %235 }
 0x2a2   :  { %498 = vmatpush.msk.msra.mxu2 %vm216_vm4, %v218_v59 }
 0x2a3   :  { %499 = vmatmul.msk.f32.vlgmr.msra.gmra.mxu2 %vm108_vm2, %v214_v58 }
 0x2ab   :  { %500 = vmatmul.msk.f32.gmra.mxu2 %vm108_vm2, %v215_v60 }
 0x326   :  { %v261_v62 = vpop.f32.mrf.mxu2 }
 0x327   :  { %v262_v63 = vadd.f32 %v261_v62, %v232_v61 }
 0x329   :  { %v267_v0 = vmul.f32 0.1, %v262_v63 }
 0x32b   :  { %v269_v1 = vmax.f32 %v262_v63, %v267_v0 }
 0x32d   :  { %280 = vrot.lane.b32.xlu1 %v269_v1, %s636_s11 }
 0x32e   :  { %v264_v3 = vpop.f32.mrf.mxu2 }
 0x32f   :  { %v265_v4 = vadd.f32 %v264_v3, %v236_v2 }
 0x331   :  { %v268_v5 = vmul.f32 0.1, %v265_v4 }
 0x333   :  { %v270_v6 = vmax.f32 %v265_v4, %v268_v5 }
 0x335   :  { %291 = vperm.xlu1 %548, %v750_v29   ;;  %276 = vrot.lane.b32.xlu2 %v270_v6, %s637_s12 }
 0x336   :  { %282 = vrot.lane.b32.xlu0 %v270_v6, %s636_s11 }
 0x33d   :  { %324 = vperm.xlu1 %548, %v756_v30   ;;  %287 = vperm.xlu2 %549, %v743_v28  }
 0x33e   :  { %274 = vrot.lane.b32.xlu0 %v269_v1, %s637_s12 }
 0x345   :  { %551 = vset.pattern.permute.xlu1 %v644_v36  ;;  %552 = vset.pattern.permute.xlu2 %v644_v36 }
 0x346   :  { %328 = vperm.xlu0 %550, %v762_v31  }
 0x34e   :  { %553 = vset.pattern.permute.xlu0 %v644_v36 }
 0x38f   :  { %v277_v11 = vpop.permute.xlu2 %276 }
 0x397   :  { %v288_v17 = vpop.permute.xlu2 %287 }
 0x39f   :  { %v281_v10 = vpop.permute.xlu1 %280 }
 0x3a7   :  { %v292_v16 = vpop.permute.xlu1 %291 }
 0x3a8   :  { %v283_v7 = vpop.permute.xlu0 %282 }
 0x3a9   :  { %501 = vmatpush.msk.msra.mxu3 %vm91_vm0, %v283_v7 }
 0x3ab   :  { %502 = vmatpush.msk.msra.mxu3 %vm91_vm0, %v281_v10 }
 0x3ad   :  { %312 = vmatpush.msra.mxu3 %v270_v6 }
 0x3af   :  { %313 = vmatpush.msra.mxu3 %v269_v1  ;;  %v325_v20 = vpop.permute.xlu1 %324 }
 0x3b0   :  { %v275_v14 = vpop.permute.xlu0 %274 }
 0x3b1   :  { %503 = vmatpush.msk.msra.mxu3 %vm84_vm1, %v277_v11 }
 0x3b3   :  { %504 = vmatpush.msk.msra.mxu3 %vm84_vm1, %v275_v14 }
 0x3b4   :  { %505 = vmatmul.msk.f32.vlgmr.msra.gmra.mxu3 %vm108_vm2, %v272_v13 }
 0x3b8   :  { %v329_v25 = vpop.permute.xlu0 %328 }
 0x3bc   :  { %506 = vmatmul.msk.f32.gmra.mxu3 %vm108_vm2, %v273_v15 }
 0x437   :  { %v317_v18 = vpop.f32.mrf.mxu3 }
 0x438   :  { %v318_v19 = vadd.f32 %v317_v18, %v288_v17 }
 0x43a   :  { %v331_v21 = vmul.f32 %v325_v20, %v318_v19 }
 0x43c   :  { %v810_v22 = vadd.f32 %v331_v21, %v776_v44 }
 0x43e   :  { %v335_v23 = vmul.f32 0.1, %v810_v22 }
 0x43f   :  { %v320_v24 = vpop.f32.mrf.mxu3 }
 0x440   :  { %v321_v26 = vadd.f32 %v320_v24, %v292_v16  ;;  %v337_v27 = vmax.f32 %v810_v22, %v335_v23 }
 0x442   :  { %v332_v32 = vmul.f32 %v329_v25, %v321_v26  ;;  %343 = vrot.lane.b32.xlu0 %v337_v27, %s642_s23  ;;  %350 = vrot.lane.b32.xlu1 %v337_v27, %s643_s24 }
 0x444   :  { %v815_v33 = vadd.f32 %v332_v32, %v781_v51 }
 0x446   :  { %v336_v34 = vmul.f32 0.1, %v815_v33 }
 0x448   :  { %v338_v35 = vmax.f32 %v815_v33, %v336_v34 }
 0x44a   :  { %352 = vrot.lane.b32.xlu2 %v338_v35, %s643_s24  ;;  %361 = vperm.xlu1 %551, %v716_v9   ;;  %v340_v9 = vld [vmem:[#allocation2 + $0x20] sm:$0xff] }
 0x452   :  { %345 = vrot.lane.b32.xlu2 %v338_v35, %s642_s23 }
 0x45a   :  { %357 = vperm.xlu2 %552, %v725_v12   ;;  %v341_v12 = vld [vmem:[#allocation2 + $0x28] sm:$0xff] }
 0x4a4   :  { %v353_v37 = vpop.permute.xlu2 %352 }
 0x4a5   :  { %507 = vmatpush.msk.msrb.mxu0 %vm349_vm5, %v353_v37  ;;  %519 = vmatpush.msk.msrb.mxu2 %vm349_vm5, %v353_v37 }
 0x4ac   :  { %v346_v39 = vpop.permute.xlu2 %345 }
 0x4b4   :  { %v351_v38 = vpop.permute.xlu1 %350  ;;  %v344_v40 = vpop.permute.xlu0 %343 }
 0x4b5   :  { %508 = vmatpush.msk.msrb.mxu0 %vm349_vm5, %v351_v38  ;;  %520 = vmatpush.msk.msrb.mxu2 %vm349_vm5, %v351_v38  ;;  %v358_v41 = vpop.permute.xlu2 %357 }
 0x4b7   :  { %382 = vmatpush.msrb.mxu0 %v338_v35  ;;  %521 = vmatpush.msrb.mxu2 %v338_v35 }
 0x4b9   :  { %383 = vmatpush.msrb.mxu0 %v337_v27  ;;  %522 = vmatpush.msrb.mxu2 %v337_v27 }
 0x4bb   :  { %509 = vmatpush.msk.msrb.mxu0 %vm342_vm6, %v346_v39  ;;  %523 = vmatpush.msk.msrb.mxu2 %vm342_vm6, %v346_v39 }
 0x4bc   :  { %v362_v45 = vpop.permute.xlu1 %361 }
 0x4bd   :  { %510 = vmatpush.msk.msrb.mxu0 %vm342_vm6, %v344_v40  ;;  %524 = vmatpush.msk.msrb.mxu2 %vm342_vm6, %v344_v40 }
 0x4be   :  { %511 = vmatmul.msk.f32.vlgmr.msrb.gmra.mxu0 %vm108_vm2, %v340_v9  ;;  %512 = vmatmul.msk.f32.vlgmr.msrb.gmra.mxu2 %vm108_vm2, %v341_v12 }
 0x53b   :  { %v387_v42 = vpop.f32.mrf.mxu0 }
 0x53c   :  { %v388_v43 = vadd.f32 %v387_v42, %v358_v41 }
 0x53e   :  { %v393_v44 = vmul.f32 0.1, %v388_v43 }
 0x540   :  { %v395_v46 = vmax.f32 %v388_v43, %v393_v44 }
 0x541   :  { %v390_v47 = vpop.f32.mrf.mxu2 }
 0x542   :  { %v391_v48 = vadd.f32 %v390_v47, %v362_v45  ;;  %406 = vrot.lane.b32.xlu1 %v395_v46, %s636_s11 }
 0x544   :  { %v394_v49 = vmul.f32 0.1, %v391_v48 }
 0x546   :  { %v396_v50 = vmax.f32 %v391_v48, %v394_v49 }
 0x548   :  { %402 = vrot.lane.b32.xlu2 %v396_v50, %s637_s12  ;;  %408 = vrot.lane.b32.xlu0 %v396_v50, %s636_s11 }
 0x54a   :  { %413 = vperm.xlu1 %551, %v743_v28  }
 0x550   :  { %417 = vperm.xlu2 %552, %v750_v29   ;;  %400 = vrot.lane.b32.xlu0 %v395_v46, %s637_s12  ;;  %v398_v29 = vld [vmem:[#allocation5 + $0x20] sm:$0xff] }
 0x552   :  { %454 = vperm.xlu1 %551, %v762_v31  }
 0x558   :  { %450 = vperm.xlu0 %553, %v756_v30   ;;  %v399_v30 = vld [vmem:[#allocation5 + $0x28] sm:$0xff] }
 0x5a2   :  { %v403_v28 = vpop.permute.xlu2 %402 }
 0x5aa   :  { %v418_v59 = vpop.permute.xlu2 %417 }
 0x5b4   :  { %v407_v52 = vpop.permute.xlu1 %406 }
 0x5ba   :  { %v409_v51 = vpop.permute.xlu0 %408 }
 0x5bb   :  { %513 = vmatpush.msk.msrb.mxu1 %vm91_vm0, %v409_v51  ;;  %525 = vmatpush.msk.msrb.mxu3 %vm91_vm0, %v409_v51 }
 0x5bc   :  { %v414_v53 = vpop.permute.xlu1 %413 }
 0x5bd   :  { %514 = vmatpush.msk.msrb.mxu1 %vm91_vm0, %v407_v52  ;;  %526 = vmatpush.msk.msrb.mxu3 %vm91_vm0, %v407_v52 }
 0x5bf   :  { %438 = vmatpush.msrb.mxu1 %v396_v50  ;;  %527 = vmatpush.msrb.mxu3 %v396_v50 }
 0x5c1   :  { %439 = vmatpush.msrb.mxu1 %v395_v46  ;;  %528 = vmatpush.msrb.mxu3 %v395_v46 }
 0x5c2   :  { %v401_v31 = vpop.permute.xlu0 %400 }
 0x5c3   :  { %515 = vmatpush.msk.msrb.mxu1 %vm84_vm1, %v403_v28  ;;  %529 = vmatpush.msk.msrb.mxu3 %vm84_vm1, %v403_v28 }
 0x5c4   :  { %v455_v62 = vpop.permute.xlu1 %454 }
 0x5c5   :  { %516 = vmatpush.msk.msrb.mxu1 %vm84_vm1, %v401_v31  ;;  %530 = vmatpush.msk.msrb.mxu3 %vm84_vm1, %v401_v31 }
 0x5c6   :  { %517 = vmatmul.msk.f32.vlgmr.msrb.gmra.mxu1 %vm108_vm2, %v398_v29  ;;  %518 = vmatmul.msk.f32.vlgmr.msrb.gmra.mxu3 %vm108_vm2, %v399_v30 }
 0x5ca   :  { %v451_v55 = vpop.permute.xlu0 %450 }
 0x643   :  { %v443_v54 = vpop.f32.mrf.mxu1 }
 0x644   :  { %v444_v56 = vadd.f32 %v443_v54, %v414_v53 }
 0x646   :  { %v457_v57 = vmul.f32 %v451_v55, %v444_v56 }
 0x648   :  { %v459_v58 = vadd.f32 %v457_v57, %v810_v22 }
 0x649   :  { %v446_v60 = vpop.f32.mrf.mxu3 }
 0x64a   :  { %461 = vst [vmem:[#allocation7] sm:$0xff] %v459_v58  ;;  %v447_v61 = vadd.f32 %v446_v60, %v418_v59 }
 0x64c   :  { %v458_v8 = vmul.f32 %v455_v62, %v447_v61 }
 0x64e   :  { %v460_v63 = vadd.f32 %v458_v8, %v815_v33 }
 0x650   :  { %462 = vst [vmem:[#allocation7 + $0x8] sm:$0xff] %v460_v63 }
 0x651   :  { %475 = dma.vmem_to_hbm [thread:$0]  %s468_s26, 256, %s470_s7, [#allocation4], %s633_s29, %s633_s29, %s634_s30  }
 0x652   :  { %630 = dma.done.wait [#allocation4], 256  }
 0x653   :  { %631 = vsyncadd [#allocation4], 4294967040 }
 0x654   :  { %480 = vsyncpa [#allocation3], 1 }
 0x655   :  { %481 = vsyncpa [#allocation6], 1 }
 0x656   :  { %482 = vsyncpa [#allocation4], 1 }

</bundles_post_ra>
